<compile_context>
chip_gen: v7x
topology: tpu7x:2x2x1
jax: 0.10.0
libtpu: 0.0.40
codegen_flags: <defaults>
</compile_context>

<pallas_src>
import jax
import jax.numpy as jnp
from jax import lax
from jax.experimental import pallas as pl
from jax.experimental.pallas import tpu as pltpu

_LANE = 128
_STRIP_TEMP_BYTES = 256 * 1024      # live f32 strip temporaries stay ~<= 3x this


def _round_up(x: int, m: int) -> int:
    return ((x + m - 1) // m) * m


def _cdiv(a: int, b: int) -> int:
    return (a + b - 1) // b


def _vmem_budget() -> tuple[int, int]:
    """(usable bytes for pipelined blocks, vmem_limit_bytes), generation-aware."""
    try:
        phys = int(getattr(pltpu.get_tpu_info(), "vmem_capacity_bytes", 0) or 0)
    except Exception:
        phys = 0
    if phys <= 0:
        phys = 64 * 1024 * 1024     # unknown -> assume the smallest (v7x: 64 MiB)
    limit = min(phys * 3 // 4, 96 * 1024 * 1024)   # v7x: 48 MiB, v5e/v6e: 96 MiB
    usable = limit * 2 // 3                        # slack for temps / internal scratch
    return usable, limit


def _sigmoid_f32(x):
    return 1.0 / (1.0 + jnp.exp(-x))


def _strip_loop(u_ref, v_ref, emit, *, strip, n_strips, mask=None):
    """Rowwise dot product strip-by-strip over the sublane (row) axis."""
    def body(s, carry):
        r0 = pl.multiple_of(s * strip, strip)
        us = u_ref[pl.ds(r0, strip), :].astype(jnp.float32)
        vs = v_ref[pl.ds(r0, strip), :].astype(jnp.float32)
        prod = us * vs
        if mask is not None:
            prod = jnp.where(mask, prod, 0.0)
        emit(r0, jnp.sum(prod, axis=-1, keepdims=True))
        return carry

    lax.fori_loop(0, n_strips, body, None, unroll=n_strips <= 4)


def _make_full_d_kernel(strip, n_strips):
    """Common case: whole reduction axis resident per block -> no scratch, no pl.when."""
    def kernel(u_ref, v_ref, o_ref):
        def emit(r0, dot):
            o_ref[pl.ds(r0, strip), :] = _sigmoid_f32(dot).astype(o_ref.dtype)
        _strip_loop(u_ref, v_ref, emit, strip=strip, n_strips=n_strips)
    return kernel


def _make_tiled_d_kernel(strip, n_strips, tile_d, d):
    """Huge-D fallback: reduction tiled over a trailing grid axis + f32 accumulator."""
    ragged_d = (d % tile_d) != 0

    def kernel(u_ref, v_ref, o_ref, acc_ref):
        k = pl.program_id(1)

        @pl.when(k == 0)
        def _init():
            acc_ref[...] = jnp.zeros_like(acc_ref)

        mask = None
        if ragged_d:
            # No host-side pad: mask out-of-range lanes of the last D tile so
            # garbage from the partial block never enters the sum.
            lane = lax.broadcasted_iota(jnp.int32, (strip, tile_d), 1)
            mask = (k * tile_d + lane) < d

        def emit(r0, dot):
            acc_ref[pl.ds(r0, strip), :] += dot

        _strip_loop(u_ref, v_ref, emit, strip=strip, n_strips=n_strips, mask=mask)

        @pl.when(k == pl.num_programs(1) - 1)
        def _finish():
            o_ref[...] = _sigmoid_f32(acc_ref[...]).astype(o_ref.dtype)

    return kernel


def sigmoid_prediction_head(u: jax.Array, v: jax.Array, *,
                            tile_n: int | None = None,
                            tile_d: int | None = None) -> jax.Array:
    """Equivalent of torch.sigmoid(torch.sum(u * v, dim=1)). u, v: [N, D] -> [N]."""
    if u.ndim != 2 or u.shape != v.shape:
        raise ValueError(f"expected matching 2-D inputs, got {u.shape} and {v.shape}")
    n, d = u.shape

    out_dtype = jnp.promote_types(u.dtype, v.dtype)
    in_isz = max(jnp.dtype(u.dtype).itemsize, jnp.dtype(v.dtype).itemsize)
    min_isz = min(jnp.dtype(u.dtype).itemsize, jnp.dtype(v.dtype).itemsize)
    out_isz = jnp.dtype(out_dtype).itemsize
    pack = max(8, 32 // max(1, min_isz))   # sublane packing quantum: f32->8, bf16->16, i8->32

    usable, vmem_limit = _vmem_budget()

    # ---- reduction (lane) axis: keep full D per block unless it is absurd ----
    if tile_d is not None and tile_d >= d:
        tile_d = None
    if tile_d is None:
        if 4 * pack * _round_up(d, _LANE) * in_isz <= usable:
            tile_d = d                     # common case: one reduction step
        else:                              # pathologically large D
            tile_d = max(_LANE, (usable // (8 * pack * in_isz)) // _LANE * _LANE)
            tile_d = min(tile_d, _round_up(d, _LANE))
    tiled_d = tile_d != d
    if tiled_d and tile_d % _LANE != 0:
        raise ValueError(f"tile_d must be a multiple of {_LANE} (or the full D), got {tile_d}")

    padded_d = tile_d if tiled_d else _round_up(d, _LANE)

    # Conservative VMEM bytes per block row: 2 inputs x 2 pipeline buffers, the
    # double-buffered (tile_n, 1) output block, and (tiled path) the f32
    # accumulator — all assuming the lane dim pads to 128 in VMEM.
    row_bytes = 4 * padded_d * in_isz + 2 * _LANE * out_isz + (_LANE * 4 if tiled_d else 0)

    # Strip size: bounds the live in-kernel f32 temporaries.
    strip_cap = max(pack, (_STRIP_TEMP_BYTES // (padded_d * 4)) // pack * pack)
    strip_cap = min(strip_cap, 2048)

    if tile_n is None:
        rows_cap = max(pack, usable // row_bytes)
        t = _cdiv(n, rows_cap)             # pick the tile COUNT first (bounds padding waste)
        if n > pack:
            t = max(t, 2)                  # >=2 parallel tiles so both v7x TensorCores work
        tile_n = min(_round_up(_cdiv(n, t), pack), _round_up(n, pack))
        strip = min(strip_cap, tile_n)
        if tile_n % strip != 0:
            tile_n = min(_round_up(tile_n, strip), _round_up(n, strip))
    else:
        if tile_n % pack != 0:
            raise ValueError(f"tile_n must be a multiple of {pack}, got {tile_n}")
        strip = min(strip_cap, tile_n)
        while tile_n % strip != 0:         # largest pack-multiple divisor <= strip_cap
            strip -= pack
    n_strips = tile_n // strip

    grid_n = _cdiv(n, tile_n)

    common = dict(
        out_shape=jax.ShapeDtypeStruct((n, 1), out_dtype),
        compiler_params=pltpu.CompilerParams(
            dimension_semantics=("parallel", "arbitrary") if tiled_d else ("parallel",),
            vmem_limit_bytes=vmem_limit,
        ),
    )

    if not tiled_d:
        out = pl.pallas_call(
            _make_full_d_kernel(strip, n_strips),
            grid_spec=pl.GridSpec(
                grid=(grid_n,),
                in_specs=[pl.BlockSpec((tile_n, d), lambda i: (i, 0)),
                          pl.BlockSpec((tile_n, d), lambda i: (i, 0))],
                out_specs=pl.BlockSpec((tile_n, 1), lambda i: (i, 0)),
            ),
            **common,
        )(u, v)
    else:
        grid_k = _cdiv(d, tile_d)
        out = pl.pallas_call(
            _make_tiled_d_kernel(strip, n_strips, tile_d, d),
            grid_spec=pl.GridSpec(
                grid=(grid_n, grid_k),     # reduction axis last
                in_specs=[pl.BlockSpec((tile_n, tile_d), lambda i, k: (i, k)),
                          pl.BlockSpec((tile_n, tile_d), lambda i, k: (i, k))],
                out_specs=pl.BlockSpec((tile_n, 1), lambda i, k: (i, 0)),
                scratch_shapes=[pltpu.VMEM((tile_n, 1), jnp.float32)],
            ),
            **common,
        )(u, v)

    return out[:, 0]


if __name__ == "__main__":
    key = jax.random.PRNGKey(0)
    keys = jax.random.split(key, 8)

    # 1) Small shapes consistent with the module: 8 candidate edges, 32-dim embeddings.
    u = jax.random.normal(keys[0], (8, 32), dtype=jnp.float32)
    v = jax.random.normal(keys[1], (8, 32), dtype=jnp.float32)
    out = jax.block_until_ready(sigmoid_prediction_head(u, v))
    ref = jax.nn.sigmoid(jnp.sum(u * v, axis=1))
    assert out.shape == (8,)
    assert jnp.allclose(out, ref, atol=1e-5, rtol=1e-5), "mismatch (base)"

    # 2) Ragged N: two parallel tiles, last one partial (no host-side pad/transpose).
    u2 = jax.random.normal(keys[2], (300, 48), dtype=jnp.float32)
    v2 = jax.random.normal(keys[3], (300, 48), dtype=jnp.float32)
    out2 = jax.block_until_ready(sigmoid_prediction_head(u2, v2))
    ref2 = jax.nn.sigmoid(jnp.sum(u2 * v2, axis=1))
    assert out2.shape == (300,)
    assert jnp.allclose(out2, ref2, atol=1e-5, rtol=1e-5), "mismatch (ragged N)"

    # 3) Tiled-reduction path: D grid axis + f32 accumulator + in-kernel D-tail mask.
    u3 = jax.random.normal(keys[4], (64, 200), dtype=jnp.float32)
    v3 = jax.random.normal(keys[5], (64, 200), dtype=jnp.float32)
    out3 = jax.block_until_ready(sigmoid_prediction_head(u3, v3, tile_d=128))
    ref3 = jax.nn.sigmoid(jnp.sum(u3 * v3, axis=1))
    assert out3.shape == (64,)
    assert jnp.allclose(out3, ref3, atol=1e-5, rtol=1e-5), "mismatch (tiled D)"

    # 4) bf16 inputs (f32 accumulation inside the kernel, bf16 output).
    u4 = jax.random.normal(keys[6], (64, 32), dtype=jnp.bfloat16)
    v4 = jax.random.normal(keys[7], (64, 32), dtype=jnp.bfloat16)
    out4 = jax.block_until_ready(sigmoid_prediction_head(u4, v4))
    ref4 = jax.nn.sigmoid(
        jnp.sum(u4.astype(jnp.float32) * v4.astype(jnp.float32), axis=1))
    assert out4.shape == (64,) and out4.dtype == jnp.bfloat16
    assert jnp.allclose(out4.astype(jnp.float32), ref4, atol=2e-2), "mismatch (bf16)"

    print("KERNEL_OK")
</pallas_src>

<mosaic_0001>
module attributes {stable_mosaic.version = 11 : i64} {
  func.func @kernel(%arg0: i32, %arg1: memref<8x32xf32, #tpu.memory_space<vmem>>, %arg2: memref<8x32xf32, #tpu.memory_space<vmem>>, %arg3: memref<8x1xf32, #tpu.memory_space<vmem>>) attributes {dimension_semantics = [#tpu.dimension_semantics<parallel>], iteration_bounds = array<i64: 1>, scalar_prefetch = 0 : i64, scratch_operands = 0 : i64, tpu.core_type = #tpu.core_type<tc>, window_params = [{transform_indices = @transform_0, window_bounds = array<i64: 8, 32>}, {transform_indices = @transform_1, window_bounds = array<i64: 8, 32>}, {transform_indices = @transform_2, window_bounds = array<i64: 8, 1>}]} {
    %c0_i32 = arith.constant 0 : i32
    %c8_i32 = arith.constant 8 : i32
    %0 = arith.muli %c0_i32, %c8_i32 : i32
    %1 = tpu.assume_multiple %0, 8 : i32
    %2 = arith.index_cast %1 : i32 to index
    %c0 = arith.constant 0 : index
    %3 = vector.load %arg1[%2, %c0] : memref<8x32xf32, #tpu.memory_space<vmem>>, vector<8x32xf32>
    %4 = arith.index_cast %1 : i32 to index
    %c0_0 = arith.constant 0 : index
    %5 = vector.load %arg2[%4, %c0_0] : memref<8x32xf32, #tpu.memory_space<vmem>>, vector<8x32xf32>
    %6 = arith.mulf %3, %5 : vector<8x32xf32>
    %cst = arith.constant dense<0.000000e+00> : vector<8xf32>
    %7 = vector.multi_reduction <add>, %6, %cst [1] : vector<8x32xf32> to vector<8xf32>
    %8 = vector.shape_cast %7 : vector<8xf32> to vector<8x1xf32>
    %cst_1 = arith.constant 0.000000e+00 : f32
    %9 = vector.broadcast %cst_1 : f32 to vector<8x1xf32>
    %10 = arith.subf %9, %8 : vector<8x1xf32>
    %11 = math.exp %10 : vector<8x1xf32>
    %cst_2 = arith.constant 1.000000e+00 : f32
    %12 = vector.broadcast %cst_2 : f32 to vector<8x1xf32>
    %13 = arith.addf %12, %11 : vector<8x1xf32>
    %cst_3 = arith.constant 1.000000e+00 : f32
    %14 = vector.broadcast %cst_3 : f32 to vector<8x1xf32>
    %15 = arith.divf %14, %13 : vector<8x1xf32>
    %16 = arith.index_cast %1 : i32 to index
    %c0_4 = arith.constant 0 : index
    %17 = vector.load %arg3[%16, %c0_4] : memref<8x1xf32, #tpu.memory_space<vmem>>, vector<8x1xf32>
    tpu.vector_store %arg3[%16, %c0_4], %15 {strides = array<i32>} : memref<8x1xf32, #tpu.memory_space<vmem>>, vector<8x1xf32>,
    %c1_i32 = arith.constant 1 : i32
    return
  }
  func.func @transform_0(%arg0: i32) -> (i32, i32) {
    %c0_i32 = arith.constant 0 : i32
    %c0_i32_0 = arith.constant 0 : i32
    return %arg0, %c0_i32 : i32, i32
  }
  func.func @transform_1(%arg0: i32) -> (i32, i32) {
    %c0_i32 = arith.constant 0 : i32
    %c0_i32_0 = arith.constant 0 : i32
    return %arg0, %c0_i32 : i32, i32
  }
  func.func @transform_2(%arg0: i32) -> (i32, i32) {
    %c0_i32 = arith.constant 0 : i32
    %c0_i32_0 = arith.constant 0 : i32
    return %arg0, %c0_i32 : i32, i32
  }
}

</mosaic_0001>

<bundles_post_ra>
// kernel: tpu_custom_call.1
= control target key start
LH: loop header
LB: loop body
LE: loop exit
PB: predicated region body
PF: predicated region fallthrough
CT: control target
= control target key end

     0   :  { %7 = vsyncpa [#allocation3], 0  ;;  %s154_s0 = inlined_call_operand.hbm [shape: f32[8,32], index: 0, kind: input, shape index: {}]   ;;  %s155_s1 = inlined_call_operand.hbm [shape: f32[8,32], index: 1, kind: input, shape index: {}]   ;;  %s156_s2 = inlined_call_operand.vmem [shape: f32[8,1], index: 2, kind: output, shape index: {}]  }
   0x1   :  { %8 = vsyncpa [#allocation5], 0  ;;  %s110_s9 = smov [#allocation2]   ;;  %s111_s11 = smov [#allocation4]  }
   0x2   :  { %s15_s10 = sshll.u32 %s110_s9, 4  ;;  %s25_s12 = sshll.u32 %s111_s11, 4  ;;  %s16_s10 = int_to_ptr.vmem [resolvable:$true] %s15_s10  ;;  %s26_s12 = int_to_ptr.vmem [resolvable:$true] %s25_s12 }
   0x3   :  { %s62_s15 = scalar_lea.hbm %s154_s0, 128 }
   0x4   :  { %p63_p0 = scmp.ne.s32.totalorder %s154_s0, %s62_s15  ;;  %p66_p1 = scmp.lt.u32.totalorder %s62_s15, %s154_s0 }
   0x6   :  { %p68_p2 = pnand %p66_p1, %p63_p0 }
   0x8   :  { %71 = shalt.err (!%p68_p2)
}
   0x9   :  { %s72_s20 = scalar_lea.vmem %s16_s10, 128  ;;  %p77_p4 = scmp.lt.s32.totalorder %s16_s10, %s16_s10 }
   0xa   :  { %p73_p3 = scmp.ne.s32.totalorder %s16_s10, %s72_s20  ;;  %p78_p5 = scmp.lt.s32.totalorder %s72_s20, %s72_s20 }
   0xc   :  { %p79_p6 = por %p78_p5, %p77_p4 }
   0xe   :  { %p80_p7 = pnand %p79_p6, %p73_p3 }
  0x10   :  { %83 = shalt.err (!%p80_p7)
}
  0x11   :  { %18 = dma.hbm_to_vmem [thread:$0]  %s154_s0, 128, %s16_s10, [#allocation3]  }
  0x12   :  { %s84_s25 = scalar_lea.hbm %s155_s1, 128 }
  0x13   :  { %p85_p8 = scmp.ne.s32.totalorder %s155_s1, %s84_s25  ;;  %p88_p9 = scmp.lt.u32.totalorder %s84_s25, %s155_s1 }
  0x15   :  { %p90_p10 = pnand %p88_p9, %p85_p8 }
  0x17   :  { %93 = shalt.err (!%p90_p10)
}
  0x18   :  { %s94_s30 = scalar_lea.vmem %s26_s12, 128  ;;  %p99_p12 = scmp.lt.s32.totalorder %s26_s12, %s26_s12 }
  0x19   :  { %p95_p11 = scmp.ne.s32.totalorder %s26_s12, %s94_s30  ;;  %p100_p13 = scmp.lt.s32.totalorder %s94_s30, %s94_s30 }
  0x1b   :  { %p101_p0 = por %p100_p13, %p99_p12 }
  0x1d   :  { %p102_p1 = pnand %p101_p0, %p95_p11 }
  0x1f   :  { %105 = shalt.err (!%p102_p1)
}
  0x20   :  { %28 = dma.hbm_to_vmem [thread:$0]  %s155_s1, 128, %s26_s12, [#allocation5]  }
  0x21   :  { %106 = dma.done.wait [#allocation3], 128  }
  0x22   :  { %107 = vsyncadd [#allocation3], 4294967168 }
  0x23   :  { %108 = dma.done.wait [#allocation5], 128  }
  0x24   :  { %109 = vsyncadd [#allocation5], 4294967168  ;;  %v35_v0 = vld [vmem:[#allocation2] sm:$0xff]  ;;  %v36_v1 = vld [vmem:[#allocation4] sm:$0xff]  ;;  %vm38_vm0 = vcmask 261120   ;;  %vm48_vm1 = vcmask 7168  }
  0x25   :  { %v37_v2 = vmul.f32 %v36_v1, %v35_v0 }
  0x27   :  { %v39_v3 = vsel %vm38_vm0, %v37_v2, 0.0 }
  0x28   :  { %40 = vadd.xlane.f32.xlu0 %v39_v3 }
  0xb5   :  { %v41_v4 = vpop.xlane.xlu0 %40 }
  0xb6   :  { %v42_v5 = vsub.f32 0.0, %v41_v4 }
  0xb8   :  { %v43_v6 = vmul.f32 1.442695, %v42_v5 }
  0xba   :  { %58 = vpow2.f32 %v43_v6 }
  0xc4   :  { %v59_v7 = vpop.eup %58 }
  0xc5   :  { %v45_v8 = vadd.f32 1.0, %v59_v7 }
  0xc7   :  { %60 = vrcp.f32 %v45_v8 }
  0xd1   :  { %v61_v9 = vpop.eup %60 }
  0xd2   :  { %49 = vst.msk [vmem:[%s156_s2] sm:$0xff] %vm48_vm1, %v61_v9 }
  0xd3   :  { %54 = vsyncpa [#allocation3], 1 }
  0xd4   :  { %55 = vsyncpa [#allocation5], 1 }

</bundles_post_ra>
